<compile_context>
chip_gen: v7x
topology: tpu7x:2x2x1
jax: 0.10.0
libtpu: 0.0.40
codegen_flags: <defaults>
</compile_context>

<pallas_src>
import functools

import jax
import jax.numpy as jnp
from jax import lax
from jax.experimental import pallas as pl
from jax.experimental.pallas import tpu as pltpu

_LANES = 128
_SUBLANES = 8


def _tversky_partial_kernel(x_ref, t_ref, tp_ref, sp_ref, st_ref, *,
                            num_classes, tile_rows, inner_steps, n_valid,
                            needs_mask):
    """Accumulate lane/sublane-partial sums of p*t, p and t for one tile.

    x_ref, t_ref : (B, C, TILE_ROWS, 128) input blocks (native DMA dtype).
    tp/sp/st_ref : (1, B, C, 8, 128) f32 output blocks, resident across the
                   inner (reduction) grid axis -> used directly as accumulators.
    """
    @pl.when(pl.program_id(1) == 0)
    def _init():
        tp_ref[...] = jnp.zeros_like(tp_ref)
        sp_ref[...] = jnp.zeros_like(sp_ref)
        st_ref[...] = jnp.zeros_like(st_ref)

    x = x_ref[...].astype(jnp.float32)          # (B, C, TR, 128)
    t = t_ref[...].astype(jnp.float32)

    if num_classes > 1:
        # Softmax over the channel axis — a *major* axis in this layout, so the
        # max/sum are per-vreg VALU ops across already-loaded vregs.
        m = jnp.max(x, axis=1, keepdims=True)
        e = jnp.exp(x - m)
        s = jnp.sum(e, axis=1, keepdims=True)
        p = e * pl.reciprocal(s, approx=True)   # EUP vrcp, frees VALU slots
    else:
        p = jax.nn.sigmoid(x)

    if needs_mask:
        # Padded pixels have zero targets already, so only Σp needs masking —
        # but masking p once is enough for all three sums.
        row_ids = lax.broadcasted_iota(jnp.int32, (tile_rows, _LANES), 0)
        lane_ids = lax.broadcasted_iota(jnp.int32, (tile_rows, _LANES), 1)
        tile_row0 = (pl.program_id(0) * inner_steps
                     + pl.program_id(1)) * tile_rows
        flat = (tile_row0 + row_ids) * _LANES + lane_ids
        p = p * (flat < n_valid).astype(jnp.float32)[None, None, :, :]

    b, c = x.shape[0], x.shape[1]
    g = tile_rows // _SUBLANES
    # Collapse only the major row-group axis (pure vreg adds); keep the (8,128)
    # vreg shape so the accumulator stores stay lane-dense (no masked vst).
    tp_ref[0] += jnp.sum((p * t).reshape(b, c, g, _SUBLANES, _LANES), axis=2)
    sp_ref[0] += jnp.sum(p.reshape(b, c, g, _SUBLANES, _LANES), axis=2)
    st_ref[0] += jnp.sum(t.reshape(b, c, g, _SUBLANES, _LANES), axis=2)


def _choose_tile_rows(num_rows, bc, x_itemsize, t_itemsize, budget_bytes):
    """Largest multiple-of-8 row tile fitting the VMEM budget (temp-aware)."""
    # Per tile-row: 2x double-buffered inputs + ~5 full-tile f32 temporaries
    # (x/t casts, e, p, p*t) from the softmax / partial-sum stream.
    per_row = bc * _LANES * (2 * (x_itemsize + t_itemsize) + 5 * 4)
    tr = max(_SUBLANES, (budget_bytes // per_row) // _SUBLANES * _SUBLANES)
    r_cap = pl.cdiv(num_rows, _SUBLANES) * _SUBLANES   # don't exceed what's needed
    return int(min(tr, max(_SUBLANES, r_cap)))


def tversky_loss(inputs, targets, *, smooth=1.0, alpha=0.5, beta=0.5,
                 gamma=1.0, tile_rows=None,
                 tile_budget_bytes=24 * 1024 * 1024,
                 vmem_limit_bytes=48 * 1024 * 1024,
                 target_dma_dtype=jnp.bfloat16):
    """inputs, targets: (B, C, H, W) arrays (NCHW, like the PyTorch module).

    target_dma_dtype: dtype used to stream the targets (0/1 masks are exact in
    bf16; pass None to keep the caller's dtype, e.g. for soft labels).
    """
    B, C, H, W = inputs.shape
    N = H * W

    x = inputs.reshape(B, C, N)
    t = targets.reshape(B, C, N)
    if target_dma_dtype is not None:
        t = t.astype(target_dma_dtype)       # halves/quarters target HBM traffic

    x_item = jnp.dtype(x.dtype).itemsize
    t_item = jnp.dtype(t.dtype).itemsize

    R = pl.cdiv(N, _LANES)                    # number of 128-lane rows
    if tile_rows is None:
        tile_rows = _choose_tile_rows(R, B * C, x_item, t_item,
                                      tile_budget_bytes)
    tile_rows = max(_SUBLANES, (int(tile_rows) // _SUBLANES) * _SUBLANES)

    num_n = pl.cdiv(R, tile_rows)
    # Guarantee an even tile count whenever there are >= 2 tiles so the outer
    # "parallel" axis always splits 2-way across v7x's two TensorCores; an
    # extra padded tile (if any) is fully masked in-kernel.
    if num_n >= 2 and num_n % 2 == 1:
        num_n += 1
    num_p = 2 if num_n >= 2 else 1
    inner = num_n // num_p

    r_pad = num_n * tile_rows
    n_pad = r_pad * _LANES
    needs_mask = n_pad != N
    if needs_mask:
        pad = n_pad - N
        x = jnp.pad(x, ((0, 0), (0, 0), (0, pad)))
        t = jnp.pad(t, ((0, 0), (0, 0), (0, pad)))
    x = x.reshape(B, C, r_pad, _LANES)
    t = t.reshape(B, C, r_pad, _LANES)

    kernel = functools.partial(
        _tversky_partial_kernel, num_classes=C, tile_rows=tile_rows,
        inner_steps=inner, n_valid=N, needs_mask=needs_mask)

    in_map = lambda pi, ni: (0, 0, pi * inner + ni, 0)
    out_map = lambda pi, ni: (pi, 0, 0, 0, 0)
    acc_shape = jax.ShapeDtypeStruct((num_p, B, C, _SUBLANES, _LANES),
                                     jnp.float32)

    tp_p, sp_p, st_p = pl.pallas_call(
        kernel,
        grid=(num_p, inner),
        in_specs=[
            pl.BlockSpec((B, C, tile_rows, _LANES), in_map),
            pl.BlockSpec((B, C, tile_rows, _LANES), in_map),
        ],
        out_specs=[
            pl.BlockSpec((1, B, C, _SUBLANES, _LANES), out_map),
            pl.BlockSpec((1, B, C, _SUBLANES, _LANES), out_map),
            pl.BlockSpec((1, B, C, _SUBLANES, _LANES), out_map),
        ],
        out_shape=(acc_shape, acc_shape, acc_shape),
        compiler_params=pltpu.CompilerParams(
            dimension_semantics=("parallel", "arbitrary"),
            vmem_limit_bytes=vmem_limit_bytes,
        ),
    )(x, t)

    # Tiny O(B*C) epilogue in plain JAX: collapse the parallel chunks and the
    # deferred (8, 128) partials, then the Tversky ratio / gamma / mean.
    tp = jnp.sum(tp_p, axis=(0, 3, 4))
    sum_p = jnp.sum(sp_p, axis=(0, 3, 4))
    sum_t = jnp.sum(st_p, axis=(0, 3, 4))
    fp = sum_p - tp
    fn = sum_t - tp
    tversky = (tp + smooth) / (tp + alpha * fp + beta * fn + smooth)
    base = 1.0 - tversky
    if float(gamma) == 1.0:
        term = base
    else:
        # clamp: rounding can push tversky marginally above 1 -> NaN in pow
        term = jnp.maximum(base, 0.0) ** gamma
    per_batch = jnp.sum(term, axis=1)          # sum over channels -> (B,)
    return jnp.mean(per_batch) / float(C)


def _reference(inputs, targets, *, smooth=1.0, alpha=0.5, beta=0.5, gamma=1.0):
    # pure-JAX reference mirroring the PyTorch module, for a sanity check
    B, C, H, W = inputs.shape
    x = inputs.astype(jnp.float32)
    t = targets.astype(jnp.float32)
    if C > 1:
        p = jax.nn.softmax(x, axis=1)
    else:
        p = jax.nn.sigmoid(x)
    p = p.reshape(B, C, -1)
    t = t.reshape(B, C, -1)
    tp = jnp.sum(p * t, axis=2)
    fp = jnp.sum((1.0 - t) * p, axis=2)
    fn = jnp.sum(t * (1.0 - p), axis=2)
    tv = (tp + smooth) / (tp + alpha * fp + beta * fn + smooth)
    per_batch = jnp.sum((1.0 - tv) ** gamma, axis=1)
    return jnp.mean(per_batch) / float(C)


if __name__ == "__main__":
    key = jax.random.PRNGKey(0)
    k1, k2, k3, k4 = jax.random.split(key, 4)
    # Tolerance is loosened vs. 1e-5 because of pl.reciprocal(approx=True)
    # (~2^-12 relative error in the softmax normalization).
    RTOL = ATOL = 2e-3

    # Case 1: small NCHW logits + one-hot masks (auto tiling; ragged N masked).
    B, C, H, W = 2, 4, 16, 16
    x1 = jax.random.normal(k1, (B, C, H, W), dtype=jnp.float32)
    lbl1 = jax.random.randint(k2, (B, H, W), 0, C)
    t1 = jax.nn.one_hot(lbl1, C, axis=1).astype(jnp.float32)
    out1 = jax.block_until_ready(tversky_loss(x1, t1))
    ref1 = jax.block_until_ready(_reference(x1, t1))
    assert jnp.allclose(out1, ref1, rtol=RTOL, atol=ATOL), (out1, ref1)

    # Case 2: exercises a (2 parallel x 2 inner) grid, multi-vreg row tiles
    # (g=2), an odd->even padded tile count, the mask path and gamma != 1.
    B, C, H, W = 2, 4, 80, 80
    x2 = jax.random.normal(k3, (B, C, H, W), dtype=jnp.float32)
    lbl2 = jax.random.randint(k4, (B, H, W), 0, C)
    t2 = jax.nn.one_hot(lbl2, C, axis=1).astype(jnp.float32)
    out2 = jax.block_until_ready(tversky_loss(x2, t2, gamma=2.0, tile_rows=16))
    ref2 = jax.block_until_ready(_reference(x2, t2, gamma=2.0))
    assert jnp.allclose(out2, ref2, rtol=RTOL, atol=ATOL), (out2, ref2)

    # Case 3: single-channel (sigmoid) path.
    x3 = jax.random.normal(k1, (2, 1, 16, 16), dtype=jnp.float32)
    t3 = (jax.random.uniform(k2, (2, 1, 16, 16)) > 0.5).astype(jnp.float32)
    out3 = jax.block_until_ready(tversky_loss(x3, t3))
    ref3 = jax.block_until_ready(_reference(x3, t3))
    assert jnp.allclose(out3, ref3, rtol=RTOL, atol=ATOL), (out3, ref3)

    print("KERNEL_OK")
</pallas_src>

<mosaic_0001>
module attributes {stable_mosaic.version = 11 : i64} {
  func.func @_tversky_partial_kernel(%arg0: i32, %arg1: i32, %arg2: memref<2x4x8x128xf32, #tpu.memory_space<vmem>>, %arg3: memref<2x4x8x128xbf16, #tpu.memory_space<vmem>>, %arg4: memref<1x2x4x8x128xf32, #tpu.memory_space<vmem>>, %arg5: memref<1x2x4x8x128xf32, #tpu.memory_space<vmem>>, %arg6: memref<1x2x4x8x128xf32, #tpu.memory_space<vmem>>) attributes {dimension_semantics = [#tpu.dimension_semantics<parallel>, #tpu.dimension_semantics<arbitrary>], iteration_bounds = array<i64: 1, 1>, scalar_prefetch = 0 : i64, scratch_operands = 0 : i64, tpu.core_type = #tpu.core_type<tc>, window_params = [{transform_indices = @transform_0, window_bounds = array<i64: 2, 4, 8, 128>}, {transform_indices = @transform_1, window_bounds = array<i64: 2, 4, 8, 128>}, {transform_indices = @transform_2, window_bounds = array<i64: 1, 2, 4, 8, 128>}, {transform_indices = @transform_3, window_bounds = array<i64: 1, 2, 4, 8, 128>}, {transform_indices = @transform_4, window_bounds = array<i64: 1, 2, 4, 8, 128>}]} {
    %c0_i32 = arith.constant 0 : i32
    %0 = arith.cmpi eq, %arg1, %c0_i32 : i32
    %1 = arith.extui %0 : i1 to i32
    %c0_i32_0 = arith.constant 0 : i32
    %2 = arith.cmpi ne, %1, %c0_i32_0 : i32
    scf.if %2 {
      %cst_42 = arith.constant 0.000000e+00 : f32
      %58 = vector.broadcast %cst_42 : f32 to vector<1x2x4x8x128xf32>
      %c0_43 = arith.constant 0 : index
      %c0_44 = arith.constant 0 : index
      %c0_45 = arith.constant 0 : index
      %c0_46 = arith.constant 0 : index
      %c0_47 = arith.constant 0 : index
      %59 = vector.load %arg4[%c0_43, %c0_44, %c0_45, %c0_46, %c0_47] : memref<1x2x4x8x128xf32, #tpu.memory_space<vmem>>, vector<1x2x4x8x128xf32>
      tpu.vector_store %arg4[%c0_43, %c0_44, %c0_45, %c0_46, %c0_47], %58 {strides = array<i32>} : memref<1x2x4x8x128xf32, #tpu.memory_space<vmem>>, vector<1x2x4x8x128xf32>,
      %cst_48 = arith.constant 0.000000e+00 : f32
      %60 = vector.broadcast %cst_48 : f32 to vector<1x2x4x8x128xf32>
      %c0_49 = arith.constant 0 : index
      %c0_50 = arith.constant 0 : index
      %c0_51 = arith.constant 0 : index
      %c0_52 = arith.constant 0 : index
      %c0_53 = arith.constant 0 : index
      %61 = vector.load %arg5[%c0_49, %c0_50, %c0_51, %c0_52, %c0_53] : memref<1x2x4x8x128xf32, #tpu.memory_space<vmem>>, vector<1x2x4x8x128xf32>
      tpu.vector_store %arg5[%c0_49, %c0_50, %c0_51, %c0_52, %c0_53], %60 {strides = array<i32>} : memref<1x2x4x8x128xf32, #tpu.memory_space<vmem>>, vector<1x2x4x8x128xf32>,
      %cst_54 = arith.constant 0.000000e+00 : f32
      %62 = vector.broadcast %cst_54 : f32 to vector<1x2x4x8x128xf32>
      %c0_55 = arith.constant 0 : index
      %c0_56 = arith.constant 0 : index
      %c0_57 = arith.constant 0 : index
      %c0_58 = arith.constant 0 : index
      %c0_59 = arith.constant 0 : index
      %63 = vector.load %arg6[%c0_55, %c0_56, %c0_57, %c0_58, %c0_59] : memref<1x2x4x8x128xf32, #tpu.memory_space<vmem>>, vector<1x2x4x8x128xf32>
      tpu.vector_store %arg6[%c0_55, %c0_56, %c0_57, %c0_58, %c0_59], %62 {strides = array<i32>} : memref<1x2x4x8x128xf32, #tpu.memory_space<vmem>>, vector<1x2x4x8x128xf32>,
    } else {
    }
    %c0 = arith.constant 0 : index
    %c0_1 = arith.constant 0 : index
    %c0_2 = arith.constant 0 : index
    %c0_3 = arith.constant 0 : index
    %3 = vector.load %arg2[%c0, %c0_1, %c0_2, %c0_3] : memref<2x4x8x128xf32, #tpu.memory_space<vmem>>, vector<2x4x8x128xf32>
    %c0_4 = arith.constant 0 : index
    %c0_5 = arith.constant 0 : index
    %c0_6 = arith.constant 0 : index
    %c0_7 = arith.constant 0 : index
    %4 = vector.load %arg3[%c0_4, %c0_5, %c0_6, %c0_7] : memref<2x4x8x128xbf16, #tpu.memory_space<vmem>>, vector<2x4x8x128xbf16>
    %5 = arith.extf %4 : vector<2x4x8x128xbf16> to vector<2x4x8x128xf32>
    %cst = arith.constant dense<0xFF800000> : vector<2x8x128xf32>
    %6 = vector.multi_reduction <maximumf>, %3, %cst [1] : vector<2x4x8x128xf32> to vector<2x8x128xf32>
    %7 = vector.shape_cast %6 : vector<2x8x128xf32> to vector<2x1x8x128xf32>
    %8 = vector.broadcast %7 : vector<2x1x8x128xf32> to vector<2x4x8x128xf32>
    %9 = arith.subf %3, %8 : vector<2x4x8x128xf32>
    %10 = math.exp %9 : vector<2x4x8x128xf32>
    %cst_8 = arith.constant dense<0.000000e+00> : vector<2x8x128xf32>
    %11 = vector.multi_reduction <add>, %10, %cst_8 [1] : vector<2x4x8x128xf32> to vector<2x8x128xf32>
    %12 = vector.shape_cast %11 : vector<2x8x128xf32> to vector<2x1x8x128xf32>
    %13 = tpu.reciprocal %12 {approx = true} : vector<2x1x8x128xf32> -> vector<2x1x8x128xf32>
    %14 = vector.broadcast %13 : vector<2x1x8x128xf32> to vector<2x4x8x128xf32>
    %15 = arith.mulf %10, %14 : vector<2x4x8x128xf32>
    %16 = tpu.iota {dimensions = array<i32: 0>} : vector<8x128xi32>
    %17 = tpu.iota {dimensions = array<i32: 1>} : vector<8x128xi32>
    %c1_i32 = arith.constant 1 : i32
    %18 = arith.muli %arg0, %c1_i32 : i32
    %19 = arith.addi %18, %arg1 : i32
    %c8_i32 = arith.constant 8 : i32
    %20 = arith.muli %19, %c8_i32 : i32
    %21 = vector.broadcast %20 : i32 to vector<8x128xi32>
    %22 = arith.addi %21, %16 : vector<8x128xi32>
    %c128_i32 = arith.constant 128 : i32
    %23 = vector.broadcast %c128_i32 : i32 to vector<8x128xi32>
    %24 = arith.muli %22, %23 : vector<8x128xi32>
    %25 = arith.addi %24, %17 : vector<8x128xi32>
    %c256_i32 = arith.constant 256 : i32
    %26 = vector.broadcast %c256_i32 : i32 to vector<8x128xi32>
    %27 = arith.cmpi slt, %25, %26 : vector<8x128xi32>
    %28 = arith.extui %27 : vector<8x128xi1> to vector<8x128xi32>
    %29 = arith.sitofp %28 : vector<8x128xi32> to vector<8x128xf32>
    %30 = vector.shape_cast %29 : vector<8x128xf32> to vector<1x1x8x128xf32>
    %31 = vector.broadcast %30 : vector<1x1x8x128xf32> to vector<2x4x8x128xf32>
    %32 = arith.mulf %15, %31 : vector<2x4x8x128xf32>
    %c0_9 = arith.constant 0 : index
    %c0_10 = arith.constant 0 : index
    %c0_11 = arith.constant 0 : index
    %c0_12 = arith.constant 0 : index
    %c0_13 = arith.constant 0 : index
    %33 = vector.load %arg4[%c0_9, %c0_10, %c0_11, %c0_12, %c0_13] : memref<1x2x4x8x128xf32, #tpu.memory_space<vmem>>, vector<1x2x4x8x128xf32>
    %34 = vector.shape_cast %33 : vector<1x2x4x8x128xf32> to vector<2x4x8x128xf32>
    %35 = arith.mulf %32, %5 : vector<2x4x8x128xf32>
    %36 = vector.shape_cast %35 : vector<2x4x8x128xf32> to vector<2x4x1x8x128xf32>
    %cst_14 = arith.constant dense<0.000000e+00> : vector<2x4x8x128xf32>
    %37 = vector.multi_reduction <add>, %36, %cst_14 [2] : vector<2x4x1x8x128xf32> to vector<2x4x8x128xf32>
    %38 = arith.addf %34, %37 : vector<2x4x8x128xf32>
    %c0_15 = arith.constant 0 : index
    %c0_16 = arith.constant 0 : index
    %c0_17 = arith.constant 0 : index
    %c0_18 = arith.constant 0 : index
    %c0_19 = arith.constant 0 : index
    %39 = vector.load %arg4[%c0_15, %c0_16, %c0_17, %c0_18, %c0_19] : memref<1x2x4x8x128xf32, #tpu.memory_space<vmem>>, vector<1x2x4x8x128xf32>
    %40 = vector.shape_cast %39 : vector<1x2x4x8x128xf32> to vector<2x4x8x128xf32>
    %41 = vector.shape_cast %38 : vector<2x4x8x128xf32> to vector<1x2x4x8x128xf32>
    tpu.vector_store %arg4[%c0_15, %c0_16, %c0_17, %c0_18, %c0_19], %41 {strides = array<i32>} : memref<1x2x4x8x128xf32, #tpu.memory_space<vmem>>, vector<1x2x4x8x128xf32>,
    %c0_20 = arith.constant 0 : index
    %c0_21 = arith.constant 0 : index
    %c0_22 = arith.constant 0 : index
    %c0_23 = arith.constant 0 : index
    %c0_24 = arith.constant 0 : index
    %42 = vector.load %arg5[%c0_20, %c0_21, %c0_22, %c0_23, %c0_24] : memref<1x2x4x8x128xf32, #tpu.memory_space<vmem>>, vector<1x2x4x8x128xf32>
    %43 = vector.shape_cast %42 : vector<1x2x4x8x128xf32> to vector<2x4x8x128xf32>
    %44 = vector.shape_cast %32 : vector<2x4x8x128xf32> to vector<2x4x1x8x128xf32>
    %cst_25 = arith.constant dense<0.000000e+00> : vector<2x4x8x128xf32>
    %45 = vector.multi_reduction <add>, %44, %cst_25 [2] : vector<2x4x1x8x128xf32> to vector<2x4x8x128xf32>
    %46 = arith.addf %43, %45 : vector<2x4x8x128xf32>
    %c0_26 = arith.constant 0 : index
    %c0_27 = arith.constant 0 : index
    %c0_28 = arith.constant 0 : index
    %c0_29 = arith.constant 0 : index
    %c0_30 = arith.constant 0 : index
    %47 = vector.load %arg5[%c0_26, %c0_27, %c0_28, %c0_29, %c0_30] : memref<1x2x4x8x128xf32, #tpu.memory_space<vmem>>, vector<1x2x4x8x128xf32>
    %48 = vector.shape_cast %47 : vector<1x2x4x8x128xf32> to vector<2x4x8x128xf32>
    %49 = vector.shape_cast %46 : vector<2x4x8x128xf32> to vector<1x2x4x8x128xf32>
    tpu.vector_store %arg5[%c0_26, %c0_27, %c0_28, %c0_29, %c0_30], %49 {strides = array<i32>} : memref<1x2x4x8x128xf32, #tpu.memory_space<vmem>>, vector<1x2x4x8x128xf32>,
    %c0_31 = arith.constant 0 : index
    %c0_32 = arith.constant 0 : index
    %c0_33 = arith.constant 0 : index
    %c0_34 = arith.constant 0 : index
    %c0_35 = arith.constant 0 : index
    %50 = vector.load %arg6[%c0_31, %c0_32, %c0_33, %c0_34, %c0_35] : memref<1x2x4x8x128xf32, #tpu.memory_space<vmem>>, vector<1x2x4x8x128xf32>
    %51 = vector.shape_cast %50 : vector<1x2x4x8x128xf32> to vector<2x4x8x128xf32>
    %52 = vector.shape_cast %5 : vector<2x4x8x128xf32> to vector<2x4x1x8x128xf32>
    %cst_36 = arith.constant dense<0.000000e+00> : vector<2x4x8x128xf32>
    %53 = vector.multi_reduction <add>, %52, %cst_36 [2] : vector<2x4x1x8x128xf32> to vector<2x4x8x128xf32>
    %54 = arith.addf %51, %53 : vector<2x4x8x128xf32>
    %c0_37 = arith.constant 0 : index
    %c0_38 = arith.constant 0 : index
    %c0_39 = arith.constant 0 : index
    %c0_40 = arith.constant 0 : index
    %c0_41 = arith.constant 0 : index
    %55 = vector.load %arg6[%c0_37, %c0_38, %c0_39, %c0_40, %c0_41] : memref<1x2x4x8x128xf32, #tpu.memory_space<vmem>>, vector<1x2x4x8x128xf32>
    %56 = vector.shape_cast %55 : vector<1x2x4x8x128xf32> to vector<2x4x8x128xf32>
    %57 = vector.shape_cast %54 : vector<2x4x8x128xf32> to vector<1x2x4x8x128xf32>
    tpu.vector_store %arg6[%c0_37, %c0_38, %c0_39, %c0_40, %c0_41], %57 {strides = array<i32>} : memref<1x2x4x8x128xf32, #tpu.memory_space<vmem>>, vector<1x2x4x8x128xf32>,
    return
  }
  func.func @transform_0(%arg0: i32, %arg1: i32) -> (i32, i32, i32, i32) {
    %c1_i32 = arith.constant 1 : i32
    %0 = arith.muli %arg0, %c1_i32 : i32
    %1 = arith.addi %0, %arg1 : i32
    %c0_i32 = arith.constant 0 : i32
    %c0_i32_0 = arith.constant 0 : i32
    %c0_i32_1 = arith.constant 0 : i32
    %c0_i32_2 = arith.constant 0 : i32
    return %c0_i32, %c0_i32_0, %1, %c0_i32_1 : i32, i32, i32, i32
  }
  func.func @transform_1(%arg0: i32, %arg1: i32) -> (i32, i32, i32, i32) {
    %c1_i32 = arith.constant 1 : i32
    %0 = arith.muli %arg0, %c1_i32 : i32
    %1 = arith.addi %0, %arg1 : i32
    %c0_i32 = arith.constant 0 : i32
    %c0_i32_0 = arith.constant 0 : i32
    %c0_i32_1 = arith.constant 0 : i32
    %c0_i32_2 = arith.constant 0 : i32
    return %c0_i32, %c0_i32_0, %1, %c0_i32_1 : i32, i32, i32, i32
  }
  func.func @transform_2(%arg0: i32, %arg1: i32) -> (i32, i32, i32, i32, i32) {
    %c0_i32 = arith.constant 0 : i32
    %c0_i32_0 = arith.constant 0 : i32
    %c0_i32_1 = arith.constant 0 : i32
    %c0_i32_2 = arith.constant 0 : i32
    %c0_i32_3 = arith.constant 0 : i32
    return %arg0, %c0_i32, %c0_i32_0, %c0_i32_1, %c0_i32_2 : i32, i32, i32, i32, i32
  }
  func.func @transform_3(%arg0: i32, %arg1: i32) -> (i32, i32, i32, i32, i32) {
    %c0_i32 = arith.constant 0 : i32
    %c0_i32_0 = arith.constant 0 : i32
    %c0_i32_1 = arith.constant 0 : i32
    %c0_i32_2 = arith.constant 0 : i32
    %c0_i32_3 = arith.constant 0 : i32
    return %arg0, %c0_i32, %c0_i32_0, %c0_i32_1, %c0_i32_2 : i32, i32, i32, i32, i32
  }
  func.func @transform_4(%arg0: i32, %arg1: i32) -> (i32, i32, i32, i32, i32) {
    %c0_i32 = arith.constant 0 : i32
    %c0_i32_0 = arith.constant 0 : i32
    %c0_i32_1 = arith.constant 0 : i32
    %c0_i32_2 = arith.constant 0 : i32
    %c0_i32_3 = arith.constant 0 : i32
    return %arg0, %c0_i32, %c0_i32_0, %c0_i32_1, %c0_i32_2 : i32, i32, i32, i32, i32
  }
}

</mosaic_0001>

<bundles_post_ra>
// kernel: tpu_custom_call.1
= control target key start
LH: loop header
LB: loop body
LE: loop exit
PB: predicated region body
PF: predicated region fallthrough
CT: control target
= control target key end

     0   :  { %10 = vsyncpa [#allocation3], 0  ;;  %s668_s0 = inlined_call_operand.hbm [shape: f32[2,4,8,128], index: 0, kind: input, shape index: {}]   ;;  %s669_s1 = inlined_call_operand.hbm [shape: bf16[2,4,8,128], index: 1, kind: input, shape index: {}]   ;;  %s670_s2 = inlined_call_operand.hbm [shape: f32[1,2,4,8,128], index: 2, kind: output, shape index: {0}]   ;;  %s671_s3 = inlined_call_operand.hbm [shape: f32[1,2,4,8,128], index: 3, kind: output, shape index: {1}]   ;;  %s672_s4 = inlined_call_operand.hbm [shape: f32[1,2,4,8,128], index: 4, kind: output, shape index: {2}]  }
   0x1   :  { %11 = vsyncpa [#allocation6], 0 }
   0x2   :  { %12 = vsyncpa [#allocation4], 0 }
   0x3   :  { %13 = vsyncpa [#allocation9], 0  ;;  %s492_s15 = smov [#allocation2]   ;;  %s374_s19 = scalar_lea.hbm %s668_s0, 1024 }
   0x4   :  { %s22_s16 = sshll.u32 %s492_s15, 4  ;;  %p375_p0 = scmp.ne.s32.totalorder %s668_s0, %s374_s19  ;;  %s23_s16 = int_to_ptr.vmem [resolvable:$true] %s22_s16 }
   0x5   :  { %p378_p1 = scmp.lt.u32.totalorder %s374_s19, %s668_s0 }
   0x7   :  { %p380_p2 = pnand %p378_p1, %p375_p0 }
   0x9   :  { %383 = shalt.err (!%p380_p2)
}
   0xa   :  { %s384_s24 = scalar_lea.vmem %s23_s16, 1024  ;;  %p389_p4 = scmp.lt.s32.totalorder %s23_s16, %s23_s16 }
   0xb   :  { %p385_p3 = scmp.ne.s32.totalorder %s23_s16, %s384_s24  ;;  %p390_p5 = scmp.lt.s32.totalorder %s384_s24, %s384_s24 }
   0xd   :  { %p391_p6 = por %p390_p5, %p389_p4 }
   0xf   :  { %p392_p7 = pnand %p391_p6, %p385_p3 }
  0x11   :  { %395 = shalt.err (!%p392_p7)
}
  0x12   :  { %s493_s25 = smov 128   ;;  %s494_s26 = smov 8  }
  0x13   :  { %28 = dma.hbm_to_vmem [thread:$0]  %s668_s0, 1024, %s23_s16, [#allocation3], %s493_s25, %s493_s25, %s494_s26  }
  0x14   :  { %s495_s29 = smov [#allocation5]   ;;  %s396_s7 = scalar_lea.hbm %s669_s1, 512 }
  0x15   :  { %s37_s30 = sshll.u32 %s495_s29, 4  ;;  %p397_p8 = scmp.ne.s32.totalorder %s669_s1, %s396_s7  ;;  %s38_s30 = int_to_ptr.vmem [resolvable:$true] %s37_s30 }
  0x16   :  { %p400_p9 = scmp.lt.u32.totalorder %s396_s7, %s669_s1 }
  0x18   :  { %p402_p10 = pnand %p400_p9, %p397_p8 }
  0x1a   :  { %405 = shalt.err (!%p402_p10)
}
  0x1b   :  { %s406_s12 = scalar_lea.vmem %s38_s30, 512  ;;  %p411_p12 = scmp.lt.s32.totalorder %s38_s30, %s38_s30 }
  0x1c   :  { %p407_p11 = scmp.ne.s32.totalorder %s38_s30, %s406_s12  ;;  %p412_p13 = scmp.lt.s32.totalorder %s406_s12, %s406_s12 }
  0x1e   :  { %p413_p0 = por %p412_p13, %p411_p12 }
  0x20   :  { %p414_p1 = pnand %p413_p0, %p407_p11 }
  0x22   :  { %417 = shalt.err (!%p414_p1)
}
  0x23   :  { %s496_s0 = smov 64   ;;  %s497_s13 = smov 4  }
  0x24   :  { %43 = dma.hbm_to_vmem [thread:$0]  %s669_s1, 512, %s38_s30, [#allocation6], %s496_s0, %s496_s0, %s497_s13  }
  0x25   :  { %484 = dma.done.wait [#allocation3], 1024  }
  0x26   :  { %485 = vsyncadd [#allocation3], 4294966272 }
  0x27   :  { %486 = dma.done.wait [#allocation6], 512  }
  0x28   :  { %487 = vsyncadd [#allocation6], 4294966784  ;;  %v80_v0 = vld [vmem:[#allocation2] sm:$0xff]  ;;  %v81_v1 = vld [vmem:[#allocation2 + $0x8] sm:$0xff]  ;;  %v150_v42 = vlaneseq  ;;  %v498_v62 = vmov 0.0   ;;  %s499_s1 = smov [#allocation8]  }
  0x29   :  { %v82_v2 = vld [vmem:[#allocation2 + $0x10] sm:$0xff]  ;;  %v83_v3 = vld [vmem:[#allocation2 + $0x18] sm:$0xff]  ;;  %v84_v5 = vld [vmem:[#allocation2 + $0x20] sm:$0xff]  ;;  %s292_s16 = sshll.u32 %s499_s1, 4  ;;  %s500_s17 = smov [#allocation10]   ;;  %s594_s16 = int_to_ptr.vmem [resolvable:$true] %s292_s16 }
  0x2a   :  { %v104_v4 = vmax.f32 %v80_v0, %v82_v2  ;;  %v85_v6 = vld [vmem:[#allocation2 + $0x28] sm:$0xff]  ;;  %v105_v7 = vmax.f32 %v81_v1, %v83_v3  ;;  %v86_v8 = vld [vmem:[#allocation2 + $0x30] sm:$0xff]  ;;  %v87_v9 = vld [vmem:[#allocation2 + $0x38] sm:$0xff]  ;;  %v151_v48 = vshrl.u32 %v150_v42, 7  ;;  %v153_v56 = vand.u32 127, %v150_v42  ;;  %s304_s18 = sshll.u32 %s500_s17, 4  ;;  %p423_p3 = scmp.lt.s32.totalorder %s594_s16, %s594_s16  ;;  %s604_s18 = int_to_ptr.vmem [resolvable:$true] %s304_s18 }
  0x2b   :  { %v554_v10 = vld [vmem:[#allocation5] sm:$0xff]   ;;  %v107_v11 = vmax.f32 %v84_v5, %v86_v8  ;;  %v108_v12 = vmax.f32 %v85_v6, %v87_v9  ;;  %v556_v13 = vld [vmem:[#allocation5 + $0x8] sm:$0xff]   ;;  %v558_v14 = vld [vmem:[#allocation5 + $0x10] sm:$0xff]   ;;  %s501_s19 = smov [#allocation7]   ;;  %s418_s21 = scalar_lea.vmem %s594_s16, 1024 }
  0x2c   :  { %v106_v15 = vmax.f32 %v104_v4, %v105_v7  ;;  %v327_v16 = vunpack.c.l.bf16 %v554_v10  ;;  %v328_v17 = vunpack.c.h.bf16 %v554_v10  ;;  %v331_v18 = vunpack.c.l.bf16 %v556_v13  ;;  %v563_v19 = vld [vmem:[#allocation5 + $0x18] sm:$0xff]   ;;  %s280_s20 = sshll.u32 %s501_s19, 4  ;;  %p419_p2 = scmp.ne.s32.totalorder %s594_s16, %s418_s21  ;;  %s606_s20 = int_to_ptr.vmem [resolvable:$true] %s280_s20 }
  0x2d   :  { %v109_v20 = vmax.f32 %v107_v11, %v108_v12  ;;  %v332_v21 = vunpack.c.h.bf16 %v556_v13  ;;  %v335_v22 = vunpack.c.l.bf16 %v558_v14  ;;  %v336_v23 = vunpack.c.h.bf16 %v558_v14  ;;  %p424_p4 = scmp.lt.s32.totalorder %s418_s21, %s418_s21 }
  0x2e   :  { %v110_v24 = vsub.f32 %v80_v0, %v106_v15  ;;  %v111_v25 = vsub.f32 %v81_v1, %v106_v15  ;;  %v112_v26 = vsub.f32 %v82_v2, %v106_v15  ;;  %v113_v27 = vsub.f32 %v83_v3, %v106_v15  ;;  %267 = vst [vmem:[#allocation10] sm:$0xff] %v327_v16 }
  0x2f   :  { %v114_v28 = vsub.f32 %v84_v5, %v109_v20  ;;  %v115_v29 = vsub.f32 %v85_v6, %v109_v20  ;;  %v116_v30 = vsub.f32 %v86_v8, %v109_v20  ;;  %v339_v31 = vunpack.c.l.bf16 %v563_v19  ;;  %268 = vst [vmem:[#allocation10 + $0x8] sm:$0xff] %v328_v17  ;;  %269 = vst [vmem:[#allocation10 + $0x10] sm:$0xff] %v331_v18  ;;  %p425_p5 = por %p424_p4, %p423_p3 }
  0x30   :  { %v118_v32 = vmul.f32 1.442695, %v110_v24  ;;  %v120_v33 = vmul.f32 1.442695, %v111_v25  ;;  %v122_v34 = vmul.f32 1.442695, %v112_v26  ;;  %v117_v36 = vsub.f32 %v87_v9, %v109_v20 }
  0x31   :  { %v124_v35 = vmul.f32 1.442695, %v113_v27  ;;  %v340_v37 = vunpack.c.h.bf16 %v563_v19  ;;  %v126_v38 = vmul.f32 1.442695, %v114_v28  ;;  %v128_v39 = vmul.f32 1.442695, %v115_v29  ;;  %p426_p6 = pnand %p425_p5, %p419_p2 }
  0x32   :  { %354 = vpow2.f32 %v118_v32  ;;  %v130_v40 = vmul.f32 1.442695, %v116_v30  ;;  %v132_v41 = vmul.f32 1.442695, %v117_v36  ;;  %270 = vst [vmem:[#allocation10 + $0x18] sm:$0xff] %v332_v21  ;;  %271 = vst [vmem:[#allocation10 + $0x20] sm:$0xff] %v335_v22 }
  0x33   :  { %356 = vpow2.f32 %v120_v33  ;;  %272 = vst [vmem:[#allocation10 + $0x28] sm:$0xff] %v336_v23  ;;  %273 = vst [vmem:[#allocation10 + $0x30] sm:$0xff] %v339_v31  ;;  %v158_v57 = vmul.u32 128, %v151_v48 }
  0x34   :  { %358 = vpow2.f32 %v122_v34  ;;  %274 = vst [vmem:[#allocation10 + $0x38] sm:$0xff] %v340_v37 }
  0x35   :  { %360 = vpow2.f32 %v124_v35  ;;  %v159_v60 = vadd.s32 %v158_v57, %v153_v56 }
  0x36   :  { %362 = vpow2.f32 %v126_v38 }
  0x37   :  { %364 = vpow2.f32 %v128_v39  ;;  %vm160_vm0 = vcmp.lt.s32.totalorder %v159_v60, 256 }
  0x38   :  { %366 = vpow2.f32 %v130_v40  ;;  %v324_v63 = vsel %vm160_vm0, 1.0, %v498_v62 }
  0x39   :  { %368 = vpow2.f32 %v132_v41 }
  0x3c   :  { %v355_v43 = vpop.eup %354 }
  0x3d   :  { %v357_v44 = vpop.eup %356 }
  0x3e   :  { %v359_v45 = vpop.eup %358  ;;  %v134_v46 = vadd.f32 %v357_v44, %v355_v43 }
  0x3f   :  { %v361_v47 = vpop.eup %360 }
  0x40   :  { %v363_v49 = vpop.eup %362  ;;  %v135_v50 = vadd.f32 %v359_v45, %v134_v46 }
  0x41   :  { %v365_v51 = vpop.eup %364 }
  0x42   :  { %v367_v52 = vpop.eup %366  ;;  %v136_v53 = vadd.f32 %v361_v47, %v135_v50  ;;  %v137_v54 = vadd.f32 %v365_v51, %v363_v49 }
  0x43   :  { %v369_v55 = vpop.eup %368 }
  0x44   :  { %370 = vrcp.f32 %v136_v53  ;;  %v138_v58 = vadd.f32 %v367_v52, %v137_v54 }
  0x46   :  { %v139_v59 = vadd.f32 %v369_v55, %v138_v58 }
  0x48   :  { %372 = vrcp.f32 %v139_v59 }
  0x4e   :  { %v371_v61 = vpop.eup %370 }
  0x4f   :  { %v142_v0 = vmul.f32 %v371_v61, %v355_v43  ;;  %v143_v1 = vmul.f32 %v371_v61, %v357_v44  ;;  %v144_v2 = vmul.f32 %v371_v61, %v359_v45  ;;  %v145_v3 = vmul.f32 %v371_v61, %v361_v47 }
  0x51   :  { %v163_v4 = vmul.f32 %v324_v63, %v142_v0  ;;  %v164_v5 = vmul.f32 %v324_v63, %v143_v1  ;;  %v165_v6 = vmul.f32 %v324_v63, %v144_v2  ;;  %v166_v7 = vmul.f32 %v324_v63, %v145_v3 }
  0x52   :  { %v373_v8 = vpop.eup %372 }
  0x53   :  { %v146_v9 = vmul.f32 %v373_v8, %v363_v49  ;;  %v147_v11 = vmul.f32 %v373_v8, %v365_v51  ;;  %v148_v12 = vmul.f32 %v373_v8, %v367_v52  ;;  %v149_v15 = vmul.f32 %v373_v8, %v369_v55  ;;  %235 = vst [vmem:[#allocation8] sm:$0xff] %v163_v4 }
  0x54   :  { %236 = vst [vmem:[#allocation8 + $0x8] sm:$0xff] %v164_v5  ;;  %237 = vst [vmem:[#allocation8 + $0x10] sm:$0xff] %v165_v6  ;;  %v179_v20 = vmul.f32 %v327_v16, %v163_v4  ;;  %v180_v24 = vmul.f32 %v328_v17, %v164_v5  ;;  %v181_v25 = vmul.f32 %v331_v18, %v165_v6 }
  0x55   :  { %238 = vst [vmem:[#allocation8 + $0x18] sm:$0xff] %v166_v7  ;;  %v182_v26 = vmul.f32 %v332_v21, %v166_v7  ;;  %v167_v27 = vmul.f32 %v324_v63, %v146_v9  ;;  %v168_v28 = vmul.f32 %v324_v63, %v147_v11  ;;  %v169_v29 = vmul.f32 %v324_v63, %v148_v12 }
  0x56   :  { %v170_v30 = vmul.f32 %v324_v63, %v149_v15  ;;  %203 = vst [vmem:[#allocation7] sm:$0xff] %v179_v20  ;;  %204 = vst [vmem:[#allocation7 + $0x8] sm:$0xff] %v180_v24 }
  0x57   :  { %205 = vst [vmem:[#allocation7 + $0x10] sm:$0xff] %v181_v25  ;;  %206 = vst [vmem:[#allocation7 + $0x18] sm:$0xff] %v182_v26  ;;  %v183_v10 = vmul.f32 %v335_v22, %v167_v27  ;;  %v184_v13 = vmul.f32 %v336_v23, %v168_v28  ;;  %v185_v16 = vmul.f32 %v339_v31, %v169_v29 }
  0x58   :  { %v186_v17 = vmul.f32 %v340_v37, %v170_v30  ;;  %239 = vst [vmem:[#allocation8 + $0x20] sm:$0xff] %v167_v27  ;;  %240 = vst [vmem:[#allocation8 + $0x28] sm:$0xff] %v168_v28 }
  0x59   :  { %241 = vst [vmem:[#allocation8 + $0x30] sm:$0xff] %v169_v29  ;;  %242 = vst [vmem:[#allocation8 + $0x38] sm:$0xff] %v170_v30 }
  0x5a   :  { %429 = shalt.err (!%p426_p6)
}
  0x5b   :  { %s430_s24 = scalar_lea.hbm %s671_s3, 1024 }
  0x5c   :  { %p431_p7 = scmp.ne.s32.totalorder %s671_s3, %s430_s24  ;;  %p434_p8 = scmp.lt.u32.totalorder %s430_s24, %s671_s3 }
  0x5e   :  { %p436_p9 = pnand %p434_p8, %p431_p7 }
  0x60   :  { %439 = shalt.err (!%p436_p9)
}
  0x61   :  { %298 = dma.vmem_to_hbm [thread:$0]  %s594_s16, 1024, %s671_s3, [#allocation9], %s493_s25, %s493_s25, %s494_s26  }
  0x62   :  { %s440_s7 = scalar_lea.vmem %s604_s18, 1024  ;;  %p445_p11 = scmp.lt.s32.totalorder %s604_s18, %s604_s18 }
  0x63   :  { %p441_p10 = scmp.ne.s32.totalorder %s604_s18, %s440_s7  ;;  %p446_p12 = scmp.lt.s32.totalorder %s440_s7, %s440_s7 }
  0x65   :  { %p447_p13 = por %p446_p12, %p445_p11 }
  0x67   :  { %p448_p0 = pnand %p447_p13, %p441_p10 }
  0x69   :  { %451 = shalt.err (!%p448_p0)
}
  0x6a   :  { %s452_s10 = scalar_lea.hbm %s672_s4, 1024 }
  0x6b   :  { %p453_p1 = scmp.ne.s32.totalorder %s672_s4, %s452_s10  ;;  %p456_p2 = scmp.lt.u32.totalorder %s452_s10, %s672_s4 }
  0x6d   :  { %p458_p3 = pnand %p456_p2, %p453_p1 }
  0x6f   :  { %461 = shalt.err (!%p458_p3)
}
  0x70   :  { %310 = dma.vmem_to_hbm [thread:$0]  %s604_s18, 1024, %s672_s4, [#allocation9], %s493_s25, %s493_s25, %s494_s26   ;;  %207 = vst [vmem:[#allocation7 + $0x20] sm:$0xff] %v183_v10  ;;  %208 = vst [vmem:[#allocation7 + $0x28] sm:$0xff] %v184_v13 }
  0x71   :  { %209 = vst [vmem:[#allocation7 + $0x30] sm:$0xff] %v185_v16  ;;  %210 = vst [vmem:[#allocation7 + $0x38] sm:$0xff] %v186_v17  ;;  %s462_s15 = scalar_lea.vmem %s606_s20, 1024  ;;  %p467_p5 = scmp.lt.s32.totalorder %s606_s20, %s606_s20 }
  0x72   :  { %p463_p4 = scmp.ne.s32.totalorder %s606_s20, %s462_s15  ;;  %p468_p6 = scmp.lt.s32.totalorder %s462_s15, %s462_s15 }
  0x74   :  { %p469_p7 = por %p468_p6, %p467_p5 }
  0x76   :  { %p470_p8 = pnand %p469_p7, %p463_p4 }
  0x78   :  { %473 = shalt.err (!%p470_p8)
}
  0x79   :  { %s474_s17 = scalar_lea.hbm %s670_s2, 1024 }
  0x7a   :  { %p475_p9 = scmp.ne.s32.totalorder %s670_s2, %s474_s17  ;;  %p478_p10 = scmp.lt.u32.totalorder %s474_s17, %s670_s2 }
  0x7c   :  { %p480_p11 = pnand %p478_p10, %p475_p9 }
  0x7e   :  { %483 = shalt.err (!%p480_p11)
}
  0x7f   :  { %286 = dma.vmem_to_hbm [thread:$0]  %s606_s20, 1024, %s670_s2, [#allocation4], %s493_s25, %s493_s25, %s494_s26  }
  0x80   :  { %488 = dma.done.wait [#allocation4], 1024  }
  0x81   :  { %489 = vsyncadd [#allocation4], 4294966272 }
  0x82   :  { %490 = dma.done.wait [#allocation9], 2048  }
  0x83   :  { %491 = vsyncadd [#allocation9], 4294965248 }
  0x84   :  { %320 = vsyncpa [#allocation3], 1 }
  0x85   :  { %321 = vsyncpa [#allocation6], 1 }
  0x86   :  { %322 = vsyncpa [#allocation4], 1 }
  0x87   :  { %323 = vsyncpa [#allocation9], 1 }

</bundles_post_ra>
